<compile_context>
chip_gen: v5e
topology: v5e:2x2
jax: 0.10.0
libtpu: 0.0.40
codegen_flags: <defaults>
</compile_context>

<pallas_src>
import jax
import jax.numpy as jnp
from jax.experimental import pallas as pl
from jax.experimental.pallas import tpu as pltpu


HIDDEN = 256  # width of each nn.Linear(..., 256) branch in the module


def eeg_align_kernel(eeg_ref, subj_ref, w_eeg_ref, w_subj_ref, b12_ref,
                     w3_ref, b3_ref, out_ref):
    # Fused pre-activation for BOTH branches in one (bm, 2H) f32 tile:
    #   cols [0,H)  : eeg_transform     = eeg @ W1_eeg + subj @ W1_subj + b1
    #   cols [H,2H) : subject_transform = subj @ W2 + b2
    # (w_eeg has zero columns in [H,2H), so the eeg term only hits branch 1.)
    h = (jnp.dot(eeg_ref[...], w_eeg_ref[...],
                 preferred_element_type=jnp.float32)
         + jnp.dot(subj_ref[...], w_subj_ref[...],
                   preferred_element_type=jnp.float32)
         + b12_ref[...])                      # biases pre-stored in f32
    act = jnp.maximum(h, 0.0)                 # relu on the whole 2H tile
    # output_layer on cat([transformed, subject_adj]) == one dot vs full W3.
    out = (jnp.dot(act.astype(w3_ref.dtype), w3_ref[...],
                   preferred_element_type=jnp.float32)
           + b3_ref[...])
    out_ref[...] = out.astype(out_ref.dtype)


def _round_up(x, m):
    return -(-x // m) * m


def eeg_alignment_forward(eeg_feature, subject_embedding, params, *, bm=512):
    """eeg_feature: (B, F), subject_embedding: (B, E) -> (B, E)."""
    B, F_dim = eeg_feature.shape
    Bs, E = subject_embedding.shape
    assert Bs == B
    H2 = params["w_subj"].shape[1]                     # 2 * hidden
    assert params["w_eeg"].shape == (F_dim, H2)
    assert params["w3"].shape == (H2, E)
    out_dtype = eeg_feature.dtype

    # Lane-pad the output / W3 / b3 columns to a multiple of 128 so stores are
    # unmasked vst (E=768 and E=128 are already fine; pre-pad in init_params
    # for production use — this is a tiny weight-only pad).
    En = _round_up(E, 128)
    w3, b3 = params["w3"], params["b3"]
    if En != E:
        w3 = jnp.pad(w3, ((0, 0), (0, En - E)))
        b3 = jnp.pad(b3, ((0, 0), (0, En - E)))

    # Batch tiling: whole batch in one grid step when it fits a tile,
    # otherwise bm-row tiles.  A non-divisible tail is handled by Pallas
    # boundary masking — no wrapper-side jnp.pad / extra HBM copies.
    # When B > bm the grid has >=2 "parallel" steps (both v7x TCs busy).
    if B <= bm:
        bm_eff = B
    else:
        bm_eff = _round_up(min(bm, B), 8)
    grid = (pl.cdiv(B, bm_eff),)

    def batch_spec(cols):
        return pl.BlockSpec((bm_eff, cols), lambda i: (i, 0))

    def resident_spec(shape):
        # Constant block index -> fetched once; single buffer saves VMEM.
        return pl.BlockSpec(shape, lambda i: (0, 0),
                            pipeline_mode=pl.Buffered(1))

    a_item = jnp.dtype(eeg_feature.dtype).itemsize
    w_item = jnp.dtype(params["w_eeg"].dtype).itemsize
    o_item = jnp.dtype(out_dtype).itemsize
    weight_bytes = (w_item * (F_dim * H2 + E * H2 + H2 * En)
                    + 4 * (H2 + En))                        # f32 biases
    act_bytes = a_item * B * (F_dim + E) + o_item * B * En
    flops = 2 * B * H2 * (F_dim + E + En)
    cost = pl.CostEstimate(flops=int(flops), transcendentals=0,
                           bytes_accessed=int(weight_bytes + act_bytes))

    # VMEM: single-buffered resident weights + double-buffered batch tiles
    # + f32 intermediates, with headroom; capped below v7x's 64 MiB VMEM.
    vmem_need = (weight_bytes
                 + 2 * a_item * bm_eff * (F_dim + E)        # input tiles (x2)
                 + 2 * o_item * bm_eff * En                 # output tiles (x2)
                 + 4 * bm_eff * (H2 + En))                  # f32 h/act/out
    vmem_limit = int(min(2 * vmem_need + (8 << 20), 48 << 20))

    out = pl.pallas_call(
        eeg_align_kernel,
        out_shape=jax.ShapeDtypeStruct((B, En), out_dtype),
        grid_spec=pltpu.PrefetchScalarGridSpec(
            num_scalar_prefetch=0,
            grid=grid,
            in_specs=[
                batch_spec(F_dim),               # eeg_feature tile
                batch_spec(E),                   # subject_embedding tile
                resident_spec((F_dim, H2)),      # [W1_eeg | 0]
                resident_spec((E, H2)),          # [W1_subj | W2]
                resident_spec((1, H2)),          # [b1 | b2]   (f32)
                resident_spec((H2, En)),         # W3 (full, lane-padded)
                resident_spec((1, En)),          # b3          (f32)
            ],
            out_specs=batch_spec(En),
        ),
        compiler_params=pltpu.CompilerParams(
            dimension_semantics=("parallel",),
            vmem_limit_bytes=vmem_limit),
        cost_estimate=cost,
    )(eeg_feature, subject_embedding,
      params["w_eeg"], params["w_subj"], params["b12"], w3, b3)

    return out[:, :E] if En != E else out


def init_params(key, feature_dim, embedding_dim, hidden=HIDDEN,
                dtype=jnp.float32):
    """Kernel-ready params matching the nn.Linear weights.

    Layout (matmul weights stored (in, out), i.e. transposed nn.Linear):
      w_eeg  : (F, 2H) = [ W1_eeg | zeros ]   eeg rows of eeg_transform
      w_subj : (E, 2H) = [ W1_subj | W2 ]     subject rows of both branches
      b12    : (1, 2H) = [ b1 | b2 ]  kept f32 (no per-step converts on v5e)
      w3     : (2H, E) ; b3 : (1, E)  (b3 kept f32)
    Use dtype=jnp.bfloat16 on v6e/v7x for ~2x MXU rate and half the HBM
    traffic (accumulation stays f32 inside the kernel).
    """
    ks = jax.random.split(key, 6)
    scale = 0.02
    F, E, H = feature_dim, embedding_dim, hidden
    w1_eeg = jax.random.normal(ks[0], (F, H), jnp.float32) * scale
    w1_subj = jax.random.normal(ks[1], (E, H), jnp.float32) * scale
    w2 = jax.random.normal(ks[2], (E, H), jnp.float32) * scale
    w3 = jax.random.normal(ks[3], (2 * H, E), jnp.float32) * scale
    b1 = jax.random.normal(ks[4], (1, H), jnp.float32) * scale
    b2 = jax.random.normal(ks[5], (1, H), jnp.float32) * scale
    b3 = jax.random.normal(jax.random.fold_in(key, 7), (1, E),
                           jnp.float32) * scale
    w_eeg = jnp.concatenate([w1_eeg, jnp.zeros((F, H), jnp.float32)], axis=1)
    w_subj = jnp.concatenate([w1_subj, w2], axis=1)
    return {"w_eeg": w_eeg.astype(dtype),
            "w_subj": w_subj.astype(dtype),
            "b12": jnp.concatenate([b1, b2], axis=1),     # f32
            "w3": w3.astype(dtype),
            "b3": b3}                                     # f32


def reference_forward(eeg_feature, subject_embedding, params, hidden=HIDDEN):
    """Plain-JAX f32 reference mirroring the PyTorch module exactly."""
    f32 = jnp.float32
    H = hidden
    w1_eeg = params["w_eeg"].astype(f32)[:, :H]
    w1_subj = params["w_subj"].astype(f32)[:, :H]
    w2 = params["w_subj"].astype(f32)[:, H:]
    b1 = params["b12"][:, :H]
    b2 = params["b12"][:, H:]
    w3 = params["w3"].astype(f32)
    b3 = params["b3"]
    combined = jnp.concatenate([eeg_feature, subject_embedding],
                               axis=-1).astype(f32)
    w1 = jnp.concatenate([w1_eeg, w1_subj], axis=0)
    t = jax.nn.relu(combined @ w1 + b1)
    s = jax.nn.relu(subject_embedding.astype(f32) @ w2 + b2)
    return jnp.concatenate([t, s], axis=-1) @ w3 + b3


if __name__ == "__main__":
    key = jax.random.PRNGKey(0)
    k_eeg, k_sub, k_par, k2 = jax.random.split(key, 4)

    # --- 1. small f32 case (single grid step) --------------------------------
    B, FEATURE_DIM, EMBEDDING_DIM = 8, 64, 128   # module default E=768; small here
    eeg = jax.random.normal(k_eeg, (B, FEATURE_DIM), jnp.float32)
    subj = jax.random.normal(k_sub, (B, EMBEDDING_DIM), jnp.float32)
    params = init_params(k_par, FEATURE_DIM, EMBEDDING_DIM, dtype=jnp.float32)

    out = jax.block_until_ready(eeg_alignment_forward(eeg, subj, params))
    ref = reference_forward(eeg, subj, params)
    assert out.shape == (B, EMBEDDING_DIM)
    # Tolerance allows for differing TPU f32-matmul pass decompositions
    # between the fused (split-K) kernel and the XLA concat reference.
    assert jnp.allclose(out, ref, atol=2e-3, rtol=2e-3)

    # --- 2. bf16 operand path (native bf16 MXU matmuls, f32 accumulation) ----
    params_bf16 = init_params(k_par, FEATURE_DIM, EMBEDDING_DIM,
                              dtype=jnp.bfloat16)
    out_bf16 = jax.block_until_ready(
        eeg_alignment_forward(eeg.astype(jnp.bfloat16),
                              subj.astype(jnp.bfloat16), params_bf16))
    ref_bf16 = reference_forward(eeg.astype(jnp.bfloat16),
                                 subj.astype(jnp.bfloat16), params_bf16)
    assert out_bf16.shape == (B, EMBEDDING_DIM)
    assert jnp.allclose(out_bf16.astype(jnp.float32), ref_bf16,
                        atol=2e-2, rtol=2e-2)

    # --- 3. multi-step grid, ragged batch tail, non-multiple-of-128 E --------
    B2, F2, E2 = 200, 40, 96   # 4 grid steps of 64 rows (tail masked), En=128
    k_e2, k_s2, k_p2 = jax.random.split(k2, 3)
    eeg2 = jax.random.normal(k_e2, (B2, F2), jnp.float32)
    subj2 = jax.random.normal(k_s2, (B2, E2), jnp.float32)
    params2 = init_params(k_p2, F2, E2, dtype=jnp.float32)
    out2 = jax.block_until_ready(
        eeg_alignment_forward(eeg2, subj2, params2, bm=64))
    ref2 = reference_forward(eeg2, subj2, params2)
    assert out2.shape == (B2, E2)
    assert jnp.allclose(out2, ref2, atol=2e-3, rtol=2e-3)

    print("KERNEL_OK")
</pallas_src>

<mosaic_0001>
module attributes {stable_mosaic.version = 11 : i64} {
  func.func @eeg_align_kernel(%arg0: i32, %arg1: memref<8x64xf32, #tpu.memory_space<vmem>>, %arg2: memref<8x128xf32, #tpu.memory_space<vmem>>, %arg3: memref<64x512xf32, #tpu.memory_space<vmem>>, %arg4: memref<128x512xf32, #tpu.memory_space<vmem>>, %arg5: memref<1x512xf32, #tpu.memory_space<vmem>>, %arg6: memref<512x128xf32, #tpu.memory_space<vmem>>, %arg7: memref<1x128xf32, #tpu.memory_space<vmem>>, %arg8: memref<8x128xf32, #tpu.memory_space<vmem>>) attributes {dimension_semantics = [#tpu.dimension_semantics<parallel>], iteration_bounds = array<i64: 1>, scalar_prefetch = 0 : i64, scratch_operands = 0 : i64, tpu.core_type = #tpu.core_type<tc>, window_params = [{transform_indices = @transform_0, window_bounds = array<i64: 8, 64>}, {transform_indices = @transform_1, window_bounds = array<i64: 8, 128>}, {pipeline_mode = #tpu.pipeline_mode<synchronous>, transform_indices = @transform_2, window_bounds = array<i64: 64, 512>}, {pipeline_mode = #tpu.pipeline_mode<synchronous>, transform_indices = @transform_3, window_bounds = array<i64: 128, 512>}, {pipeline_mode = #tpu.pipeline_mode<synchronous>, transform_indices = @transform_4, window_bounds = array<i64: 1, 512>}, {pipeline_mode = #tpu.pipeline_mode<synchronous>, transform_indices = @transform_5, window_bounds = array<i64: 512, 128>}, {pipeline_mode = #tpu.pipeline_mode<synchronous>, transform_indices = @transform_6, window_bounds = array<i64: 1, 128>}, {transform_indices = @transform_7, window_bounds = array<i64: 8, 128>}]} {
    %c0 = arith.constant 0 : index
    %c0_0 = arith.constant 0 : index
    %0 = vector.load %arg1[%c0, %c0_0] : memref<8x64xf32, #tpu.memory_space<vmem>>, vector<8x64xf32>
    %c0_1 = arith.constant 0 : index
    %c0_2 = arith.constant 0 : index
    %1 = vector.load %arg3[%c0_1, %c0_2] : memref<64x512xf32, #tpu.memory_space<vmem>>, vector<64x512xf32>
    %cst = arith.constant dense<0.000000e+00> : vector<8x512xf32>
    %2 = tpu.matmul %0, %1, %cst {dimension_numbers = #tpu.dot_dimension_numbers<[1], [0], [0], [1], [0, 0, 1, 1], [], []>} : vector<8x64xf32>, vector<64x512xf32>, vector<8x512xf32> -> vector<8x512xf32>
    %c0_3 = arith.constant 0 : index
    %c0_4 = arith.constant 0 : index
    %3 = vector.load %arg2[%c0_3, %c0_4] : memref<8x128xf32, #tpu.memory_space<vmem>>, vector<8x128xf32>
    %c0_5 = arith.constant 0 : index
    %c0_6 = arith.constant 0 : index
    %4 = vector.load %arg4[%c0_5, %c0_6] : memref<128x512xf32, #tpu.memory_space<vmem>>, vector<128x512xf32>
    %cst_7 = arith.constant dense<0.000000e+00> : vector<8x512xf32>
    %5 = tpu.matmul %3, %4, %cst_7 {dimension_numbers = #tpu.dot_dimension_numbers<[1], [0], [0], [1], [0, 0, 1, 1], [], []>} : vector<8x128xf32>, vector<128x512xf32>, vector<8x512xf32> -> vector<8x512xf32>
    %6 = arith.addf %2, %5 : vector<8x512xf32>
    %c0_8 = arith.constant 0 : index
    %c0_9 = arith.constant 0 : index
    %7 = vector.load %arg5[%c0_8, %c0_9] : memref<1x512xf32, #tpu.memory_space<vmem>>, vector<1x512xf32>
    %8 = vector.broadcast %7 : vector<1x512xf32> to vector<8x512xf32>
    %9 = arith.addf %6, %8 : vector<8x512xf32>
    %cst_10 = arith.constant 0.000000e+00 : f32
    %10 = vector.broadcast %cst_10 : f32 to vector<8x512xf32>
    %11 = arith.maximumf %9, %10 : vector<8x512xf32>
    %c0_11 = arith.constant 0 : index
    %c0_12 = arith.constant 0 : index
    %12 = vector.load %arg6[%c0_11, %c0_12] : memref<512x128xf32, #tpu.memory_space<vmem>>, vector<512x128xf32>
    %cst_13 = arith.constant dense<0.000000e+00> : vector<8x128xf32>
    %13 = tpu.matmul %11, %12, %cst_13 {dimension_numbers = #tpu.dot_dimension_numbers<[1], [0], [0], [1], [0, 0, 1, 1], [], []>} : vector<8x512xf32>, vector<512x128xf32>, vector<8x128xf32> -> vector<8x128xf32>
    %c0_14 = arith.constant 0 : index
    %c0_15 = arith.constant 0 : index
    %14 = vector.load %arg7[%c0_14, %c0_15] : memref<1x128xf32, #tpu.memory_space<vmem>>, vector<1x128xf32>
    %15 = vector.broadcast %14 : vector<1x128xf32> to vector<8x128xf32>
    %16 = arith.addf %13, %15 : vector<8x128xf32>
    %c0_16 = arith.constant 0 : index
    %c0_17 = arith.constant 0 : index
    %17 = vector.load %arg8[%c0_16, %c0_17] : memref<8x128xf32, #tpu.memory_space<vmem>>, vector<8x128xf32>
    tpu.vector_store %arg8[%c0_16, %c0_17], %16 {strides = array<i32>} : memref<8x128xf32, #tpu.memory_space<vmem>>, vector<8x128xf32>,
    return
  }
  func.func @transform_0(%arg0: i32) -> (i32, i32) {
    %c0_i32 = arith.constant 0 : i32
    %c0_i32_0 = arith.constant 0 : i32
    return %arg0, %c0_i32 : i32, i32
  }
  func.func @transform_1(%arg0: i32) -> (i32, i32) {
    %c0_i32 = arith.constant 0 : i32
    %c0_i32_0 = arith.constant 0 : i32
    return %arg0, %c0_i32 : i32, i32
  }
  func.func @transform_2(%arg0: i32) -> (i32, i32) {
    %c0_i32 = arith.constant 0 : i32
    %c0_i32_0 = arith.constant 0 : i32
    %c0_i32_1 = arith.constant 0 : i32
    return %c0_i32, %c0_i32_0 : i32, i32
  }
  func.func @transform_3(%arg0: i32) -> (i32, i32) {
    %c0_i32 = arith.constant 0 : i32
    %c0_i32_0 = arith.constant 0 : i32
    %c0_i32_1 = arith.constant 0 : i32
    return %c0_i32, %c0_i32_0 : i32, i32
  }
  func.func @transform_4(%arg0: i32) -> (i32, i32) {
    %c0_i32 = arith.constant 0 : i32
    %c0_i32_0 = arith.constant 0 : i32
    %c0_i32_1 = arith.constant 0 : i32
    return %c0_i32, %c0_i32_0 : i32, i32
  }
  func.func @transform_5(%arg0: i32) -> (i32, i32) {
    %c0_i32 = arith.constant 0 : i32
    %c0_i32_0 = arith.constant 0 : i32
    %c0_i32_1 = arith.constant 0 : i32
    return %c0_i32, %c0_i32_0 : i32, i32
  }
  func.func @transform_6(%arg0: i32) -> (i32, i32) {
    %c0_i32 = arith.constant 0 : i32
    %c0_i32_0 = arith.constant 0 : i32
    %c0_i32_1 = arith.constant 0 : i32
    return %c0_i32, %c0_i32_0 : i32, i32
  }
  func.func @transform_7(%arg0: i32) -> (i32, i32) {
    %c0_i32 = arith.constant 0 : i32
    %c0_i32_0 = arith.constant 0 : i32
    return %arg0, %c0_i32 : i32, i32
  }
}

</mosaic_0001>

<bundles_post_ra>
// kernel: tpu_custom_call.1
= control target key start
LH: loop header
LB: loop body
LE: loop exit
PB: predicated region body
PF: predicated region fallthrough
CT: control target
= control target key end

     0   :  { %12 = vsyncpa [#allocation3], 0  ;;  %s837_s0 = inlined_call_operand.hbm [shape: f32[8,64], index: 0, kind: input, shape index: {}]   ;;  %s838_s1 = inlined_call_operand.hbm [shape: f32[8,128], index: 1, kind: input, shape index: {}]   ;;  %s839_s2 = inlined_call_operand.hbm [shape: f32[64,512], index: 2, kind: input, shape index: {}]   ;;  %s840_s3 = inlined_call_operand.hbm [shape: f32[128,512], index: 3, kind: input, shape index: {}]   ;;  %s841_s4 = inlined_call_operand.hbm [shape: f32[1,512], index: 4, kind: input, shape index: {}]   ;;  %s842_s5 = inlined_call_operand.hbm [shape: f32[512,128], index: 5, kind: input, shape index: {}]   ;;  %s843_s6 = inlined_call_operand.vmem [shape: f32[1,128], index: 6, kind: input, shape index: {}]   ;;  %s844_s7 = inlined_call_operand.hbm [shape: f32[8,128], index: 7, kind: output, shape index: {}]  }
   0x1   :  { %13 = vsyncpa [#allocation6], 0 }
   0x2   :  { %14 = vsyncpa [#allocation9], 0 }
   0x3   :  { %15 = vsyncpa [#allocation12], 0  ;;  %s33_s26 = sshll.u32 %s838_s1, 4  ;;  %s34_s26 = int_to_ptr.hbm [resolvable:$true] %s33_s26 }
   0x4   :  { %16 = vsyncpa [#allocation4], 0  ;;  %s758_s27 = smov [#allocation5]   ;;  %s56_s8 = sshll.u32 %s840_s3, 4  ;;  %s57_s8 = int_to_ptr.hbm [resolvable:$true] %s56_s8 }
   0x5   :  { %s35_s28 = sshll.u32 %s758_s27, 4  ;;  %s759_s9 = smov [#allocation8]   ;;  %s36_s28 = int_to_ptr.vmem [resolvable:$true] %s35_s28 }
   0x6   :  { %38 = dma.hbm_to_vmem [thread:$0]  %s34_s26, 128, %s36_s28, [#allocation6]  }
   0x7   :  { %s58_s10 = sshll.u32 %s759_s9, 4  ;;  %s22_s13 = sshll.u32 %s837_s0, 4  ;;  %s59_s10 = int_to_ptr.vmem [resolvable:$true] %s58_s10  ;;  %s23_s13 = int_to_ptr.hbm [resolvable:$true] %s22_s13 }
   0x8   :  { %s760_s1 = smov 512   ;;  %s761_s14 = smov 32  }
   0x9   :  { %64 = dma.hbm_to_vmem [thread:$0]  %s57_s8, 8192, %s59_s10, [#allocation9], %s760_s1, %s760_s1, %s761_s14  }
   0xa   :  { %s43_s17 = sshll.u32 %s839_s2, 4  ;;  %s762_s18 = smov [#allocation2]   ;;  %s44_s17 = int_to_ptr.hbm [resolvable:$true] %s43_s17 }
   0xb   :  { %s24_s19 = sshll.u32 %s762_s18, 4  ;;  %s763_s3 = smov [#allocation7]   ;;  %s25_s19 = int_to_ptr.vmem [resolvable:$true] %s24_s19 }
   0xc   :  { %27 = dma.hbm_to_vmem [thread:$0]  %s23_s13, 128, %s25_s19, [#allocation3]  }
   0xd   :  { %s45_s20 = sshll.u32 %s763_s3, 4  ;;  %s70_s0 = sshll.u32 %s841_s4, 4  ;;  %s46_s20 = int_to_ptr.vmem [resolvable:$true] %s45_s20  ;;  %s71_s0 = int_to_ptr.hbm [resolvable:$true] %s70_s0 }
   0xe   :  { %51 = dma.hbm_to_vmem [thread:$0]  %s44_s17, 4096, %s46_s20, [#allocation6], %s760_s1, %s760_s1, %s761_s14  }
   0xf   :  { %s80_s25 = sshll.u32 %s842_s5, 4  ;;  %s764_s26 = smov [#allocation10]   ;;  %s81_s25 = int_to_ptr.hbm [resolvable:$true] %s80_s25 }
  0x10   :  { %s72_s2 = sshll.u32 %s764_s26, 4  ;;  %s765_s27 = smov [#allocation11]   ;;  %s73_s2 = int_to_ptr.vmem [resolvable:$true] %s72_s2 }
  0x11   :  { %75 = dma.hbm_to_vmem [thread:$0]  %s71_s0, 64, %s73_s2, [#allocation9]  }
  0x12   :  { %s82_s28 = sshll.u32 %s765_s27, 4  ;;  %s766_s29 = smov 128   ;;  %s83_s28 = int_to_ptr.vmem [resolvable:$true] %s82_s28 }
  0x13   :  { %s767_s30 = smov 8  }
  0x14   :  { %88 = dma.hbm_to_vmem [thread:$0]  %s81_s25, 8192, %s83_s28, [#allocation12], %s766_s29, %s766_s29, %s767_s30  }
  0x15   :  { %748 = dma.done.wait [#allocation3], 128  }
  0x16   :  { %749 = vsyncadd [#allocation3], 4294967168 }
  0x17   :  { %750 = dma.done.wait [#allocation6], 4224  }
  0x18   :  { %751 = vsyncadd [#allocation6], 4294963072 }
  0x19   :  { %752 = dma.done.wait [#allocation9], 8256  }
  0x1a   :  { %753 = vsyncadd [#allocation9], 4294959040 }
  0x1b   :  { %754 = dma.done.wait [#allocation12], 8192  }
  0x1c   :  { %755 = vsyncadd [#allocation12], 4294959104  ;;  %v209_v0 = vld [vmem:[#allocation8 + $0x1e0] sm:$0xff]  ;;  %v211_v1 = vld [vmem:[#allocation8 + $0x1f0] sm:$0xff]  ;;  %vm293_vm0 = vcmask 523264   ;;  %s768_s8 = smov [#allocation13]  }
  0x1d   :  { %v212_v2 = vld [vmem:[#allocation8 + $0x1f8] sm:$0xff]  ;;  %213 = vmatpush.msra.mxu0 %v209_v0  ;;  %253 = vmatpush.msra.mxu2 %v211_v1  ;;  %v205_v3 = vld [vmem:[#allocation8 + $0x1c0] sm:$0xff]  ;;  %v210_v4 = vld [vmem:[#allocation8 + $0x1e8] sm:$0xff]  ;;  %s549_s9 = sshll.u32 %s768_s8, 4  ;;  %s551_s12 = sshll.u32 %s844_s7, 4  ;;  %s550_s9 = int_to_ptr.vmem [resolvable:$true] %s549_s9  ;;  %s552_s12 = int_to_ptr.hbm [resolvable:$true] %s551_s12 }
  0x1e   :  { %v207_v5 = vld [vmem:[#allocation8 + $0x1d0] sm:$0xff]  ;;  %273 = vmatpush.msra.mxu3 %v212_v2  ;;  %233 = vmatpush.msra.mxu1 %v210_v4  ;;  %v208_v6 = vld [vmem:[#allocation8 + $0x1d8] sm:$0xff]  ;;  %v201_v7 = vld [vmem:[#allocation8 + $0x1a0] sm:$0xff] }
  0x1f   :  { %v206_v8 = vld [vmem:[#allocation8 + $0x1c8] sm:$0xff]  ;;  %214 = vmatpush.msra.mxu0 %v205_v3  ;;  %254 = vmatpush.msra.mxu2 %v207_v5  ;;  %v203_v9 = vld [vmem:[#allocation8 + $0x1b0] sm:$0xff]  ;;  %v204_v10 = vld [vmem:[#allocation8 + $0x1b8] sm:$0xff] }
  0x20   :  { %274 = vmatpush.msra.mxu3 %v208_v6  ;;  %234 = vmatpush.msra.mxu1 %v206_v8  ;;  %v197_v11 = vld [vmem:[#allocation8 + $0x180] sm:$0xff]  ;;  %v202_v12 = vld [vmem:[#allocation8 + $0x1a8] sm:$0xff]  ;;  %v199_v13 = vld [vmem:[#allocation8 + $0x190] sm:$0xff] }
  0x21   :  { %215 = vmatpush.msra.mxu0 %v201_v7  ;;  %255 = vmatpush.msra.mxu2 %v203_v9  ;;  %v200_v14 = vld [vmem:[#allocation8 + $0x198] sm:$0xff]  ;;  %v198_v15 = vld [vmem:[#allocation8 + $0x188] sm:$0xff]  ;;  %v193_v16 = vld [vmem:[#allocation8 + $0x160] sm:$0xff] }
  0x22   :  { %275 = vmatpush.msra.mxu3 %v204_v10  ;;  %235 = vmatpush.msra.mxu1 %v202_v12  ;;  %v195_v17 = vld [vmem:[#allocation8 + $0x170] sm:$0xff]  ;;  %v196_v18 = vld [vmem:[#allocation8 + $0x178] sm:$0xff]  ;;  %v194_v19 = vld [vmem:[#allocation8 + $0x168] sm:$0xff] }
  0x23   :  { %216 = vmatpush.msra.mxu0 %v197_v11  ;;  %256 = vmatpush.msra.mxu2 %v199_v13  ;;  %v189_v20 = vld [vmem:[#allocation8 + $0x140] sm:$0xff]  ;;  %v191_v21 = vld [vmem:[#allocation8 + $0x150] sm:$0xff]  ;;  %v192_v22 = vld [vmem:[#allocation8 + $0x158] sm:$0xff] }
  0x24   :  { %276 = vmatpush.msra.mxu3 %v200_v14  ;;  %236 = vmatpush.msra.mxu1 %v198_v15  ;;  %v190_v23 = vld [vmem:[#allocation8 + $0x148] sm:$0xff]  ;;  %v185_v24 = vld [vmem:[#allocation8 + $0x120] sm:$0xff]  ;;  %v187_v25 = vld [vmem:[#allocation8 + $0x130] sm:$0xff] }
  0x25   :  { %217 = vmatpush.msra.mxu0 %v193_v16  ;;  %257 = vmatpush.msra.mxu2 %v195_v17  ;;  %v188_v26 = vld [vmem:[#allocation8 + $0x138] sm:$0xff]  ;;  %v186_v27 = vld [vmem:[#allocation8 + $0x128] sm:$0xff]  ;;  %v181_v28 = vld [vmem:[#allocation8 + $0x100] sm:$0xff] }
  0x26   :  { %277 = vmatpush.msra.mxu3 %v196_v18  ;;  %237 = vmatpush.msra.mxu1 %v194_v19  ;;  %v183_v29 = vld [vmem:[#allocation8 + $0x110] sm:$0xff]  ;;  %v184_v30 = vld [vmem:[#allocation8 + $0x118] sm:$0xff]  ;;  %v182_v31 = vld [vmem:[#allocation8 + $0x108] sm:$0xff] }
  0x27   :  { %218 = vmatpush.msra.mxu0 %v189_v20  ;;  %258 = vmatpush.msra.mxu2 %v191_v21  ;;  %v177_v32 = vld [vmem:[#allocation8 + $0xe0] sm:$0xff]  ;;  %v179_v33 = vld [vmem:[#allocation8 + $0xf0] sm:$0xff]  ;;  %v180_v34 = vld [vmem:[#allocation8 + $0xf8] sm:$0xff] }
  0x28   :  { %278 = vmatpush.msra.mxu3 %v192_v22  ;;  %238 = vmatpush.msra.mxu1 %v190_v23  ;;  %v178_v35 = vld [vmem:[#allocation8 + $0xe8] sm:$0xff]  ;;  %v173_v36 = vld [vmem:[#allocation8 + $0xc0] sm:$0xff]  ;;  %v175_v37 = vld [vmem:[#allocation8 + $0xd0] sm:$0xff] }
  0x29   :  { %219 = vmatpush.msra.mxu0 %v185_v24  ;;  %259 = vmatpush.msra.mxu2 %v187_v25  ;;  %v176_v38 = vld [vmem:[#allocation8 + $0xd8] sm:$0xff]  ;;  %v174_v39 = vld [vmem:[#allocation8 + $0xc8] sm:$0xff]  ;;  %v169_v40 = vld [vmem:[#allocation8 + $0xa0] sm:$0xff] }
  0x2a   :  { %279 = vmatpush.msra.mxu3 %v188_v26  ;;  %239 = vmatpush.msra.mxu1 %v186_v27  ;;  %v171_v41 = vld [vmem:[#allocation8 + $0xb0] sm:$0xff]  ;;  %v172_v42 = vld [vmem:[#allocation8 + $0xb8] sm:$0xff]  ;;  %v170_v43 = vld [vmem:[#allocation8 + $0xa8] sm:$0xff] }
  0x2b   :  { %220 = vmatpush.msra.mxu0 %v181_v28  ;;  %260 = vmatpush.msra.mxu2 %v183_v29  ;;  %v165_v44 = vld [vmem:[#allocation8 + $0x80] sm:$0xff]  ;;  %v167_v45 = vld [vmem:[#allocation8 + $0x90] sm:$0xff]  ;;  %v168_v46 = vld [vmem:[#allocation8 + $0x98] sm:$0xff] }
  0x2c   :  { %280 = vmatpush.msra.mxu3 %v184_v30  ;;  %240 = vmatpush.msra.mxu1 %v182_v31  ;;  %v166_v47 = vld [vmem:[#allocation8 + $0x88] sm:$0xff]  ;;  %v161_v48 = vld [vmem:[#allocation8 + $0x60] sm:$0xff]  ;;  %v163_v49 = vld [vmem:[#allocation8 + $0x70] sm:$0xff] }
  0x2d   :  { %221 = vmatpush.msra.mxu0 %v177_v32  ;;  %261 = vmatpush.msra.mxu2 %v179_v33  ;;  %v164_v50 = vld [vmem:[#allocation8 + $0x78] sm:$0xff]  ;;  %v162_v51 = vld [vmem:[#allocation8 + $0x68] sm:$0xff]  ;;  %v157_v52 = vld [vmem:[#allocation8 + $0x40] sm:$0xff] }
  0x2e   :  { %281 = vmatpush.msra.mxu3 %v180_v34  ;;  %241 = vmatpush.msra.mxu1 %v178_v35  ;;  %v159_v53 = vld [vmem:[#allocation8 + $0x50] sm:$0xff]  ;;  %v160_v54 = vld [vmem:[#allocation8 + $0x58] sm:$0xff]  ;;  %v158_v55 = vld [vmem:[#allocation8 + $0x48] sm:$0xff] }
  0x2f   :  { %222 = vmatpush.msra.mxu0 %v173_v36  ;;  %262 = vmatpush.msra.mxu2 %v175_v37  ;;  %v153_v56 = vld [vmem:[#allocation8 + $0x20] sm:$0xff]  ;;  %v155_v57 = vld [vmem:[#allocation8 + $0x30] sm:$0xff]  ;;  %v156_v58 = vld [vmem:[#allocation8 + $0x38] sm:$0xff] }
  0x30   :  { %282 = vmatpush.msra.mxu3 %v176_v38  ;;  %242 = vmatpush.msra.mxu1 %v174_v39  ;;  %v154_v59 = vld [vmem:[#allocation8 + $0x28] sm:$0xff]  ;;  %v149_v60 = vld [vmem:[#allocation8] sm:$0xff]  ;;  %v151_v61 = vld [vmem:[#allocation8 + $0x10] sm:$0xff] }
  0x31   :  { %223 = vmatpush.msra.mxu0 %v169_v40  ;;  %263 = vmatpush.msra.mxu2 %v171_v41  ;;  %v152_v62 = vld [vmem:[#allocation8 + $0x18] sm:$0xff]  ;;  %v144_v63 = vld [vmem:[#allocation7 + $0xe0] sm:$0xff]  ;;  %v146_v0 = vld [vmem:[#allocation7 + $0xf0] sm:$0xff] }
  0x32   :  { %283 = vmatpush.msra.mxu3 %v172_v42  ;;  %243 = vmatpush.msra.mxu1 %v170_v43  ;;  %v147_v1 = vld [vmem:[#allocation7 + $0xf8] sm:$0xff]  ;;  %v150_v2 = vld [vmem:[#allocation8 + $0x8] sm:$0xff]  ;;  %v140_v3 = vld [vmem:[#allocation7 + $0xc0] sm:$0xff] }
  0x33   :  { %224 = vmatpush.msra.mxu0 %v165_v44  ;;  %264 = vmatpush.msra.mxu2 %v167_v45  ;;  %v145_v4 = vld [vmem:[#allocation7 + $0xe8] sm:$0xff]  ;;  %v142_v5 = vld [vmem:[#allocation7 + $0xd0] sm:$0xff]  ;;  %v143_v6 = vld [vmem:[#allocation7 + $0xd8] sm:$0xff] }
  0x34   :  { %284 = vmatpush.msra.mxu3 %v168_v46  ;;  %244 = vmatpush.msra.mxu1 %v166_v47  ;;  %v136_v7 = vld [vmem:[#allocation7 + $0xa0] sm:$0xff]  ;;  %v141_v8 = vld [vmem:[#allocation7 + $0xc8] sm:$0xff]  ;;  %v138_v9 = vld [vmem:[#allocation7 + $0xb0] sm:$0xff] }
  0x35   :  { %225 = vmatpush.msra.mxu0 %v161_v48  ;;  %265 = vmatpush.msra.mxu2 %v163_v49  ;;  %v139_v10 = vld [vmem:[#allocation7 + $0xb8] sm:$0xff]  ;;  %v132_v11 = vld [vmem:[#allocation7 + $0x80] sm:$0xff]  ;;  %v137_v12 = vld [vmem:[#allocation7 + $0xa8] sm:$0xff] }
  0x36   :  { %285 = vmatpush.msra.mxu3 %v164_v50  ;;  %245 = vmatpush.msra.mxu1 %v162_v51  ;;  %v134_v13 = vld [vmem:[#allocation7 + $0x90] sm:$0xff]  ;;  %v135_v14 = vld [vmem:[#allocation7 + $0x98] sm:$0xff]  ;;  %v128_v16 = vld [vmem:[#allocation7 + $0x60] sm:$0xff] }
  0x37   :  { %226 = vmatpush.msra.mxu0 %v157_v52  ;;  %266 = vmatpush.msra.mxu2 %v159_v53  ;;  %v148_v15 = vld [vmem:[#allocation5] sm:$0xff]  ;;  %v133_v17 = vld [vmem:[#allocation7 + $0x88] sm:$0xff]  ;;  %v130_v18 = vld [vmem:[#allocation7 + $0x70] sm:$0xff] }
  0x38   :  { %286 = vmatpush.msra.mxu3 %v160_v54  ;;  %246 = vmatpush.msra.mxu1 %v158_v55  ;;  %v131_v19 = vld [vmem:[#allocation7 + $0x78] sm:$0xff]  ;;  %v124_v20 = vld [vmem:[#allocation7 + $0x40] sm:$0xff]  ;;  %v129_v21 = vld [vmem:[#allocation7 + $0x68] sm:$0xff] }
  0x39   :  { %227 = vmatpush.msra.mxu0 %v153_v56  ;;  %267 = vmatpush.msra.mxu2 %v155_v57  ;;  %v126_v22 = vld [vmem:[#allocation7 + $0x50] sm:$0xff]  ;;  %v127_v23 = vld [vmem:[#allocation7 + $0x58] sm:$0xff]  ;;  %v120_v24 = vld [vmem:[#allocation7 + $0x20] sm:$0xff] }
  0x3a   :  { %287 = vmatpush.msra.mxu3 %v156_v58  ;;  %247 = vmatpush.msra.mxu1 %v154_v59  ;;  %v125_v25 = vld [vmem:[#allocation7 + $0x48] sm:$0xff]  ;;  %v122_v26 = vld [vmem:[#allocation7 + $0x30] sm:$0xff]  ;;  %v123_v27 = vld [vmem:[#allocation7 + $0x38] sm:$0xff] }
  0x3b   :  { %228 = vmatpush.msra.mxu0 %v149_v60  ;;  %268 = vmatpush.msra.mxu2 %v151_v61  ;;  %v116_v28 = vld [vmem:[#allocation7] sm:$0xff]  ;;  %v121_v29 = vld [vmem:[#allocation7 + $0x28] sm:$0xff]  ;;  %v118_v30 = vld [vmem:[#allocation7 + $0x10] sm:$0xff] }
  0x3c   :  { %288 = vmatpush.msra.mxu3 %v152_v62  ;;  %248 = vmatpush.msra.mxu1 %v150_v2  ;;  %v119_v31 = vld [vmem:[#allocation7 + $0x18] sm:$0xff]  ;;  %v115_v32 = vld [vmem:[#allocation2] sm:$0xff]  ;;  %v117_v33 = vld [vmem:[#allocation7 + $0x8] sm:$0xff] }
  0x3d   :  { %305 = vmatpush.msrb.mxu0 %v144_v63  ;;  %345 = vmatpush.msrb.mxu2 %v146_v0  ;;  %v410_v34 = vld [vmem:[#allocation11 + $0x78] sm:$0xff]  ;;  %v409_v36 = vld [vmem:[#allocation11 + $0x70] sm:$0xff]  ;;  %v408_v40 = vld [vmem:[#allocation11 + $0x68] sm:$0xff] }
  0x3e   :  { %365 = vmatpush.msrb.mxu3 %v147_v1  ;;  %325 = vmatpush.msrb.mxu1 %v145_v4  ;;  %v442_v35 = vld [vmem:[#allocation11 + $0x178] sm:$0xff]  ;;  %v441_v39 = vld [vmem:[#allocation11 + $0x170] sm:$0xff]  ;;  %v440_v43 = vld [vmem:[#allocation11 + $0x168] sm:$0xff] }
  0x3f   :  { %306 = vmatpush.msrb.mxu0 %v140_v3  ;;  %346 = vmatpush.msrb.mxu2 %v142_v5  ;;  %v426_v37 = vld [vmem:[#allocation11 + $0xf8] sm:$0xff]  ;;  %v425_v41 = vld [vmem:[#allocation11 + $0xf0] sm:$0xff]  ;;  %v407_v44 = vld [vmem:[#allocation11 + $0x60] sm:$0xff] }
  0x40   :  { %366 = vmatpush.msrb.mxu3 %v143_v6  ;;  %326 = vmatpush.msrb.mxu1 %v141_v8  ;;  %v458_v38 = vld [vmem:[#allocation11 + $0x1f8] sm:$0xff]  ;;  %v457_v42 = vld [vmem:[#allocation11 + $0x1f0] sm:$0xff]  ;;  %v424_v45 = vld [vmem:[#allocation11 + $0xe8] sm:$0xff] }
  0x41   :  { %307 = vmatpush.msrb.mxu0 %v136_v7  ;;  %347 = vmatpush.msrb.mxu2 %v138_v9  ;;  %v456_v46 = vld [vmem:[#allocation11 + $0x1e8] sm:$0xff]  ;;  %v439_v47 = vld [vmem:[#allocation11 + $0x160] sm:$0xff]  ;;  %v406_v48 = vld [vmem:[#allocation11 + $0x58] sm:$0xff] }
  0x42   :  { %367 = vmatpush.msrb.mxu3 %v139_v10  ;;  %327 = vmatpush.msrb.mxu1 %v137_v12  ;;  %v423_v49 = vld [vmem:[#allocation11 + $0xe0] sm:$0xff]  ;;  %v438_v51 = vld [vmem:[#allocation11 + $0x158] sm:$0xff]  ;;  %v405_v52 = vld [vmem:[#allocation11 + $0x50] sm:$0xff] }
  0x43   :  { %308 = vmatpush.msrb.mxu0 %v132_v11  ;;  %348 = vmatpush.msrb.mxu2 %v134_v13  ;;  %v455_v50 = vld [vmem:[#allocation11 + $0x1e0] sm:$0xff]  ;;  %v422_v53 = vld [vmem:[#allocation11 + $0xd8] sm:$0xff]  ;;  %v404_v55 = vld [vmem:[#allocation11 + $0x48] sm:$0xff] }
  0x44   :  { %368 = vmatpush.msrb.mxu3 %v135_v14  ;;  %229 = vmatmul.f32.vlgmr.msra.gmra.mxu0 %v148_v15  ;;  %v454_v54 = vld [vmem:[#allocation11 + $0x1d8] sm:$0xff]  ;;  %v421_v56 = vld [vmem:[#allocation11 + $0xd0] sm:$0xff]  ;;  %v403_v57 = vld [vmem:[#allocation11 + $0x40] sm:$0xff] }
  0x45   :  { %269 = vmatmul.f32.vlgmr.msra.gmra.mxu2 %v148_v15  ;;  %289 = vmatmul.f32.vlgmr.msra.gmra.mxu3 %v148_v15  ;;  %v420_v58 = vld [vmem:[#allocation11 + $0xc8] sm:$0xff]  ;;  %v402_v59 = vld [vmem:[#allocation11 + $0x38] sm:$0xff]  ;;  %v419_v60 = vld [vmem:[#allocation11 + $0xc0] sm:$0xff] }
  0x46   :  { %309 = vmatpush.msrb.mxu0 %v128_v16  ;;  %328 = vmatpush.msrb.mxu1 %v133_v17  ;;  %v437_v61 = vld [vmem:[#allocation11 + $0x150] sm:$0xff]  ;;  %v418_v0 = vld [vmem:[#allocation11 + $0xb8] sm:$0xff]  ;;  %v436_v1 = vld [vmem:[#allocation11 + $0x148] sm:$0xff] }
  0x47   :  { %349 = vmatpush.msrb.mxu2 %v130_v18  ;;  %369 = vmatpush.msrb.mxu3 %v131_v19  ;;  %v453_v62 = vld [vmem:[#allocation11 + $0x1d0] sm:$0xff]  ;;  %v452_v2 = vld [vmem:[#allocation11 + $0x1c8] sm:$0xff]  ;;  %v435_v5 = vld [vmem:[#allocation11 + $0x140] sm:$0xff] }
  0x48   :  { %249 = vmatmul.f32.vlgmr.msra.gmra.mxu1 %v148_v15  ;;  %310 = vmatpush.msrb.mxu0 %v124_v20  ;;  %v401_v63 = vld [vmem:[#allocation11 + $0x30] sm:$0xff]  ;;  %v400_v3 = vld [vmem:[#allocation11 + $0x28] sm:$0xff]  ;;  %v451_v6 = vld [vmem:[#allocation11 + $0x1c0] sm:$0xff] }
  0x49   :  { %329 = vmatpush.msrb.mxu1 %v129_v21  ;;  %350 = vmatpush.msrb.mxu2 %v126_v22  ;;  %v417_v4 = vld [vmem:[#allocation11 + $0xb0] sm:$0xff]  ;;  %v399_v7 = vld [vmem:[#allocation11 + $0x20] sm:$0xff]  ;;  %v416_v8 = vld [vmem:[#allocation11 + $0xa8] sm:$0xff] }
  0x4a   :  { %370 = vmatpush.msrb.mxu3 %v127_v23  ;;  %311 = vmatpush.msrb.mxu0 %v120_v24  ;;  %v434_v9 = vld [vmem:[#allocation11 + $0x138] sm:$0xff]  ;;  %v415_v12 = vld [vmem:[#allocation11 + $0xa0] sm:$0xff]  ;;  %v433_v13 = vld [vmem:[#allocation11 + $0x130] sm:$0xff] }
  0x4b   :  { %330 = vmatpush.msrb.mxu1 %v125_v25  ;;  %351 = vmatpush.msrb.mxu2 %v122_v26  ;;  %v450_v10 = vld [vmem:[#allocation11 + $0x1b8] sm:$0xff]  ;;  %v449_v14 = vld [vmem:[#allocation11 + $0x1b0] sm:$0xff]  ;;  %v432_v17 = vld [vmem:[#allocation11 + $0x128] sm:$0xff] }
  0x4c   :  { %371 = vmatpush.msrb.mxu3 %v123_v27  ;;  %312 = vmatpush.msrb.mxu0 %v116_v28  ;;  %v398_v11 = vld [vmem:[#allocation11 + $0x18] sm:$0xff]  ;;  %v397_v15 = vld [vmem:[#allocation11 + $0x10] sm:$0xff]  ;;  %v448_v18 = vld [vmem:[#allocation11 + $0x1a8] sm:$0xff] }
  0x4d   :  { %331 = vmatpush.msrb.mxu1 %v121_v29  ;;  %352 = vmatpush.msrb.mxu2 %v118_v30  ;;  %v414_v16 = vld [vmem:[#allocation11 + $0x98] sm:$0xff]  ;;  %v396_v19 = vld [vmem:[#allocation11 + $0x8] sm:$0xff]  ;;  %v413_v20 = vld [vmem:[#allocation11 + $0x90] sm:$0xff] }
  0x4e   :  { %372 = vmatpush.msrb.mxu3 %v119_v31  ;;  %564 = vmatmul.msk.f32.vlgmr.msrb.gmra.mxu0 %vm293_vm0, %v115_v32  ;;  %v431_v21 = vld [vmem:[#allocation11 + $0x120] sm:$0xff]  ;;  %v412_v24 = vld [vmem:[#allocation11 + $0x88] sm:$0xff]  ;;  %v430_v25 = vld [vmem:[#allocation11 + $0x118] sm:$0xff] }
  0x4f   :  { %566 = vmatmul.msk.f32.vlgmr.msrb.gmra.mxu2 %vm293_vm0, %v115_v32  ;;  %567 = vmatmul.msk.f32.vlgmr.msrb.gmra.mxu3 %vm293_vm0, %v115_v32  ;;  %v447_v22 = vld [vmem:[#allocation11 + $0x1a0] sm:$0xff]  ;;  %v446_v26 = vld [vmem:[#allocation11 + $0x198] sm:$0xff]  ;;  %v429_v28 = vld [vmem:[#allocation11 + $0x110] sm:$0xff] }
  0x50   :  { %332 = vmatpush.msrb.mxu1 %v117_v33  ;;  %463 = vmatpush.msra.mxu0 %v410_v34  ;;  %v395_v23 = vld [vmem:[#allocation11] sm:$0xff]  ;;  %v445_v29 = vld [vmem:[#allocation11 + $0x190] sm:$0xff]  ;;  %v428_v30 = vld [vmem:[#allocation11 + $0x108] sm:$0xff] }
  0x51   :  { %565 = vmatmul.msk.f32.vlgmr.msrb.gmra.mxu1 %vm293_vm0, %v115_v32  ;;  %503 = vmatpush.msra.mxu2 %v442_v35  ;;  %v411_v27 = vld [vmem:[#allocation11 + $0x80] sm:$0xff]  ;;  %v444_v31 = vld [vmem:[#allocation11 + $0x188] sm:$0xff] }
  0x52   :  { %464 = vmatpush.msra.mxu0 %v409_v36  ;;  %483 = vmatpush.msra.mxu1 %v426_v37  ;;  %v427_v32 = vld [vmem:[#allocation11 + $0x100] sm:$0xff]  ;;  %v377_v36 = vld [vmem:[#allocation10] sm:$0xf] }
  0x53   :  { %523 = vmatpush.msra.mxu3 %v458_v38  ;;  %504 = vmatpush.msra.mxu2 %v441_v39  ;;  %v443_v33 = vld [vmem:[#allocation11 + $0x180] sm:$0xff]  ;;  %v379_v39 = vperm.slane %v377_v36, 0 }
  0x54   :  { %465 = vmatpush.msra.mxu0 %v408_v40  ;;  %484 = vmatpush.msra.mxu1 %v425_v41 }
  0x55   :  { %524 = vmatpush.msra.mxu3 %v457_v42  ;;  %505 = vmatpush.msra.mxu2 %v440_v43  ;;  %v380_v42 = vperm.slane %v377_v36, 1 }
  0x56   :  { %466 = vmatpush.msra.mxu0 %v407_v44  ;;  %485 = vmatpush.msra.mxu1 %v424_v45 }
  0x57   :  { %525 = vmatpush.msra.mxu3 %v456_v46  ;;  %506 = vmatpush.msra.mxu2 %v439_v47 }
  0x58   :  { %467 = vmatpush.msra.mxu0 %v406_v48  ;;  %486 = vmatpush.msra.mxu1 %v423_v49  ;;  %v381_v48 = vperm.slane %v377_v36, 2  ;;  %v382_v49 = vperm.slane %v377_v36, 3 }
  0x59   :  { %526 = vmatpush.msra.mxu3 %v455_v50  ;;  %507 = vmatpush.msra.mxu2 %v438_v51 }
  0x5a   :  { %468 = vmatpush.msra.mxu0 %v405_v52  ;;  %487 = vmatpush.msra.mxu1 %v422_v53 }
  0x5b   :  { %527 = vmatpush.msra.mxu3 %v454_v54  ;;  %508 = vmatpush.msra.mxu2 %v437_v61 }
  0x5c   :  { %469 = vmatpush.msra.mxu0 %v404_v55  ;;  %488 = vmatpush.msra.mxu1 %v421_v56 }
  0x5d   :  { %528 = vmatpush.msra.mxu3 %v453_v62  ;;  %509 = vmatpush.msra.mxu2 %v436_v1 }
  0x5e   :  { %470 = vmatpush.msra.mxu0 %v403_v57  ;;  %489 = vmatpush.msra.mxu1 %v420_v58 }
  0x5f   :  { %529 = vmatpush.msra.mxu3 %v452_v2  ;;  %510 = vmatpush.msra.mxu2 %v435_v5 }
  0x60   :  { %471 = vmatpush.msra.mxu0 %v402_v59  ;;  %490 = vmatpush.msra.mxu1 %v419_v60  ;;  %v579_v59 = vld [vmem:[%s843_s6] ss:$0 sm:$0xff] }
  0x61   :  { %530 = vmatpush.msra.mxu3 %v451_v6  ;;  %511 = vmatpush.msra.mxu2 %v434_v9 }
  0x62   :  { %472 = vmatpush.msra.mxu0 %v401_v63  ;;  %491 = vmatpush.msra.mxu1 %v418_v0 }
  0x63   :  { %531 = vmatpush.msra.mxu3 %v450_v10  ;;  %512 = vmatpush.msra.mxu2 %v433_v13 }
  0x64   :  { %473 = vmatpush.msra.mxu0 %v400_v3  ;;  %492 = vmatpush.msra.mxu1 %v417_v4 }
  0x65   :  { %532 = vmatpush.msra.mxu3 %v449_v14  ;;  %513 = vmatpush.msra.mxu2 %v432_v17 }
  0x66   :  { %474 = vmatpush.msra.mxu0 %v399_v7  ;;  %493 = vmatpush.msra.mxu1 %v416_v8 }
  0x67   :  { %533 = vmatpush.msra.mxu3 %v448_v18  ;;  %514 = vmatpush.msra.mxu2 %v431_v21 }
  0x68   :  { %475 = vmatpush.msra.mxu0 %v398_v11  ;;  %494 = vmatpush.msra.mxu1 %v415_v12 }
  0x69   :  { %534 = vmatpush.msra.mxu3 %v447_v22  ;;  %515 = vmatpush.msra.mxu2 %v430_v25 }
  0x6a   :  { %476 = vmatpush.msra.mxu0 %v397_v15  ;;  %495 = vmatpush.msra.mxu1 %v414_v16 }
  0x6b   :  { %535 = vmatpush.msra.mxu3 %v446_v26  ;;  %516 = vmatpush.msra.mxu2 %v429_v28 }
  0x6c   :  { %477 = vmatpush.msra.mxu0 %v396_v19  ;;  %496 = vmatpush.msra.mxu1 %v413_v20 }
  0x6d   :  { %536 = vmatpush.msra.mxu3 %v445_v29  ;;  %517 = vmatpush.msra.mxu2 %v428_v30 }
  0x6e   :  { %478 = vmatpush.msra.mxu0 %v395_v23  ;;  %497 = vmatpush.msra.mxu1 %v412_v24 }
  0x6f   :  { %537 = vmatpush.msra.mxu3 %v444_v31  ;;  %518 = vmatpush.msra.mxu2 %v427_v32 }
  0x70   :  { %498 = vmatpush.msra.mxu1 %v411_v27 }
  0x71   :  { %538 = vmatpush.msra.mxu3 %v443_v33 }
  0xc1   :  { %v230_v34 = vpop.f32.mrf.mxu0 }
  0xc5   :  { %v250_v35 = vpop.f32.mrf.mxu1 }
  0xc8   :  { %v270_v37 = vpop.f32.mrf.mxu2  ;;  %v290_v38 = vpop.f32.mrf.mxu3 }
  0xcb   :  { %v314_v40 = vpop.f32.mrf.mxu0 }
  0xcc   :  { %v315_v41 = vadd.f32 %v314_v40, %v230_v34 }
  0xce   :  { %v387_v43 = vadd.f32 %v379_v39, %v315_v41  ;;  %v334_v44 = vpop.f32.mrf.mxu1 }
  0xcf   :  { %v335_v45 = vadd.f32 %v334_v44, %v250_v35 }
  0xd0   :  { %v391_v46 = vmax.f32 %v387_v43, 0.0 }
  0xd1   :  { %v388_v47 = vadd.f32 %v380_v42, %v335_v45 }
  0xd2   :  { %v354_v50 = vpop.f32.mrf.mxu2  ;;  %v374_v51 = vpop.f32.mrf.mxu3  ;;  %479 = vmatmul.f32.vlgmr.msra.gmra.mxu0 %v391_v46 }
  0xd3   :  { %v392_v52 = vmax.f32 %v388_v47, 0.0  ;;  %v355_v53 = vadd.f32 %v354_v50, %v270_v37  ;;  %v375_v54 = vadd.f32 %v374_v51, %v290_v38 }
  0xd5   :  { %v389_v55 = vadd.f32 %v381_v48, %v355_v53  ;;  %v390_v56 = vadd.f32 %v382_v49, %v375_v54  ;;  %499 = vmatmul.f32.vlgmr.msra.gmra.mxu1 %v392_v52 }
  0xd7   :  { %v393_v57 = vmax.f32 %v389_v55, 0.0  ;;  %v394_v58 = vmax.f32 %v390_v56, 0.0 }
  0xd9   :  { %519 = vmatmul.f32.vlgmr.msra.gmra.mxu2 %v393_v57  ;;  %539 = vmatmul.f32.vlgmr.msra.gmra.mxu3 %v394_v58 }
 0x14f   :  { %v480_v60 = vpop.f32.mrf.mxu0 }
 0x150   :  { %v481_v61 = vadd.f32 %v579_v59, %v480_v60 }
 0x152   :  { %v500_v62 = vpop.f32.mrf.mxu1 }
 0x153   :  { %v501_v63 = vadd.f32 %v500_v62, %v481_v61 }
 0x15c   :  { %v520_v0 = vpop.f32.mrf.mxu2  ;;  %v540_v2 = vpop.f32.mrf.mxu3 }
 0x15d   :  { %v521_v1 = vadd.f32 %v520_v0, %v501_v63 }
 0x15f   :  { %v541_v3 = vadd.f32 %v540_v2, %v521_v1 }
 0x161   :  { %543 = vst [vmem:[#allocation13] sm:$0xff] %v541_v3 }
 0x162   :  { %554 = dma.vmem_to_hbm [thread:$0]  %s550_s9, 128, %s552_s12, [#allocation4]  }
 0x163   :  { %756 = dma.done.wait [#allocation4], 128  }
 0x164   :  { %757 = vsyncadd [#allocation4], 4294967168 }
 0x165   :  { %559 = vsyncpa [#allocation3], 1 }
 0x166   :  { %560 = vsyncpa [#allocation6], 1 }
 0x167   :  { %561 = vsyncpa [#allocation9], 1 }
 0x168   :  { %562 = vsyncpa [#allocation12], 1 }
 0x169   :  { %563 = vsyncpa [#allocation4], 1 }

</bundles_post_ra>
